<compile_context>
chip_gen: v6e
topology: v6e:2x2x1
jax: 0.10.0
libtpu: 0.0.40
codegen_flags: <defaults>
</compile_context>

<pallas_src>
import jax
import jax.numpy as jnp
from jax.experimental import pallas as pl
from jax.experimental.pallas import tpu as pltpu

IN_FEATURES = 20
HIDDEN = 10
OUT_FEATURES = 20
N_LAYERS = 8
PAD_F = 32            # every layer width zero-padded to 32 (lane axis)
BM_CAP = 2048         # batch-tile cap; sweep 1024-4096 if desired


def mlp_kernel(x_ref, w_ref, b_ref, out_ref):
    """x_ref:  (bm, PAD_F)              f32, batch-major
       w_ref:  (N_LAYERS, PAD_F, PAD_F) bf16, W per layer stored (in, out), zero padded
       b_ref:  (N_LAYERS, 1, PAD_F)     f32, zero padded
       out_ref:(bm, PAD_F)              f32, batch-major
    """
    h = x_ref[...].astype(jnp.bfloat16)                     # bf16 MXU operand
    act = None
    for layer in range(N_LAYERS):                           # fully unrolled (8 layers)
        w = w_ref[layer]                                    # (PAD_F, PAD_F) bf16
        b = b_ref[layer]                                    # (1, PAD_F)     f32
        y = jnp.dot(h, w, preferred_element_type=jnp.float32) + b
        if layer % 2 == 0:
            act = jnp.maximum(y, 0.0)                       # ReLU    (VPU)
        else:
            act = 0.5 * jnp.tanh(0.5 * y) + 0.5             # Sigmoid (EUP tanh, no divide)
        h = act.astype(jnp.bfloat16)                        # bf16 carry between layers
    out_ref[...] = act                                      # last layer result, f32


def _round_up(v, m):
    return -(-v // m) * m


def _choose_bm(batch):
    """Batch tile (sublane axis -> multiple of 8).  >=2 blocks once batch>256
    so v7x's second TensorCore has work; harmless on v5e/v6e."""
    b8 = _round_up(max(batch, 1), 8)
    if b8 <= 256:
        return b8
    n_blocks = max(2, -(-b8 // BM_CAP))
    return _round_up(-(-b8 // n_blocks), 8)


@jax.jit
def net_forward(x, w_slab, b_slab):
    batch = x.shape[0]
    bm = _choose_bm(batch)
    b_pad = _round_up(batch, bm)
    n_blocks = b_pad // bm

    # Single zero-pad (batch and feature) -- no transposes anywhere.
    xp = jnp.zeros((b_pad, PAD_F), jnp.float32).at[:batch, :IN_FEATURES].set(x)

    # Tight-ish VMEM accounting (review item for v7x's 64 MiB part):
    # double-buffered in/out f32 blocks (lanes pad 32->128) + a few live bf16
    # activations + packed params, x2 headroom, 8 MiB floor.
    io_vmem = 2 * 2 * bm * 128 * 4
    act_vmem = 4 * bm * 128 * 2
    param_vmem = 256 * 1024
    vmem_limit = int(min(64 << 20, max(8 << 20, 2 * (io_vmem + act_vmem + param_vmem))))

    flops = 2 * N_LAYERS * PAD_F * PAD_F * b_pad
    transcendentals = (N_LAYERS // 2) * PAD_F * b_pad        # 4 sigmoid (tanh) layers
    bytes_accessed = (2 * PAD_F * b_pad * 4                  # x in + out
                      + w_slab.size * 2 + b_slab.size * 4)   # packed params

    out = pl.pallas_call(
        mlp_kernel,
        out_shape=jax.ShapeDtypeStruct((b_pad, PAD_F), jnp.float32),
        grid=(n_blocks,),
        in_specs=[
            pl.BlockSpec((bm, PAD_F), lambda i: (i, 0)),                   # x block (batch-major)
            pl.BlockSpec((N_LAYERS, PAD_F, PAD_F), lambda i: (0, 0, 0)),   # weights (VMEM-resident)
            pl.BlockSpec((N_LAYERS, 1, PAD_F), lambda i: (0, 0, 0)),       # biases  (VMEM-resident)
        ],
        out_specs=pl.BlockSpec((bm, PAD_F), lambda i: (i, 0)),
        compiler_params=pltpu.CompilerParams(
            dimension_semantics=("parallel",),               # megacore sharding on v7x
            vmem_limit_bytes=vmem_limit,
        ),
        cost_estimate=pl.CostEstimate(
            flops=flops,
            transcendentals=transcendentals,
            bytes_accessed=bytes_accessed,
        ),
    )(xp, w_slab, b_slab)

    return out[:batch, :OUT_FEATURES]                        # (B, 20), no transpose


def init_params(key):
    """Deterministic PyTorch-style init: U(-1/sqrt(fan_in), 1/sqrt(fan_in))."""
    dims = [(IN_FEATURES, HIDDEN)] + [(HIDDEN, HIDDEN)] * 6 + [(HIDDEN, OUT_FEATURES)]
    params = []
    for fan_in, fan_out in dims:
        key, kw, kb = jax.random.split(key, 3)
        bound = 1.0 / float(fan_in) ** 0.5
        w = jax.random.uniform(kw, (fan_in, fan_out), jnp.float32, -bound, bound)
        b = jax.random.uniform(kb, (fan_out,), jnp.float32, -bound, bound)
        params.append((w, b))
    return params


def pack_params(params):
    """Pack 8 layers into one bf16 W slab (in, out) + one f32 bias slab, zero padded."""
    w_slab = jnp.zeros((N_LAYERS, PAD_F, PAD_F), jnp.float32)
    b_slab = jnp.zeros((N_LAYERS, 1, PAD_F), jnp.float32)
    for l, (w, b) in enumerate(params):
        fan_in, fan_out = w.shape
        w_slab = w_slab.at[l, :fan_in, :fan_out].set(w)
        b_slab = b_slab.at[l, 0, :fan_out].set(b)
    return w_slab.astype(jnp.bfloat16), b_slab


def reference_forward(x, params):
    """Pure-JAX reference using the same bf16 operands / f32 accumulation / tanh-sigmoid.
    (For bit-fidelity to the f32 PyTorch forward, switch both to f32 operands;
    the kernel is nowhere near FLOP-bound so the cost would be negligible.)"""
    h = x.astype(jnp.bfloat16)
    act = None
    for layer, (w, b) in enumerate(params):
        y = jnp.dot(h, w.astype(jnp.bfloat16), preferred_element_type=jnp.float32) + b
        act = jnp.maximum(y, 0.0) if layer % 2 == 0 else 0.5 * jnp.tanh(0.5 * y) + 0.5
        h = act.astype(jnp.bfloat16)
    return act


if __name__ == "__main__":
    key = jax.random.PRNGKey(0)
    key, kx = jax.random.split(key)

    batch = 16                                   # matches DataLoader batch_size
    x = jax.random.normal(kx, (batch, IN_FEATURES), jnp.float32)

    params = init_params(key)
    w_slab, b_slab = pack_params(params)

    out = net_forward(x, w_slab, b_slab)
    out = jax.block_until_ready(out)

    ref = reference_forward(x, params)
    assert out.shape == (batch, OUT_FEATURES)
    assert jnp.allclose(out, ref, atol=1e-4, rtol=1e-4), float(
        jnp.max(jnp.abs(out - ref)))

    print("KERNEL_OK")
</pallas_src>

<mosaic_0001>
module attributes {stable_mosaic.version = 11 : i64} {
  func.func @mlp_kernel(%arg0: i32, %arg1: memref<16x32xf32, #tpu.memory_space<vmem>>, %arg2: memref<8x32x32xbf16, #tpu.memory_space<vmem>>, %arg3: memref<8x1x32xf32, #tpu.memory_space<vmem>>, %arg4: memref<16x32xf32, #tpu.memory_space<vmem>>) attributes {dimension_semantics = [#tpu.dimension_semantics<parallel>], iteration_bounds = array<i64: 1>, scalar_prefetch = 0 : i64, scratch_operands = 0 : i64, tpu.core_type = #tpu.core_type<tc>, window_params = [{transform_indices = @transform_0, window_bounds = array<i64: 16, 32>}, {pipeline_mode = #tpu.pipeline_mode<synchronous>, transform_indices = @transform_1, window_bounds = array<i64: 8, 32, 32>}, {pipeline_mode = #tpu.pipeline_mode<synchronous>, transform_indices = @transform_2, window_bounds = array<i64: 8, 1, 32>}, {transform_indices = @transform_3, window_bounds = array<i64: 16, 32>}]} {
    %c0 = arith.constant 0 : index
    %c0_0 = arith.constant 0 : index
    %0 = vector.load %arg1[%c0, %c0_0] : memref<16x32xf32, #tpu.memory_space<vmem>>, vector<16x32xf32>
    %1 = arith.truncf %0 : vector<16x32xf32> to vector<16x32xbf16>
    %c0_1 = arith.constant 0 : index
    %c0_2 = arith.constant 0 : index
    %c0_3 = arith.constant 0 : index
    %2 = vector.load %arg2[%c0_1, %c0_2, %c0_3] : memref<8x32x32xbf16, #tpu.memory_space<vmem>>, vector<1x32x32xbf16>
    %3 = vector.shape_cast %2 : vector<1x32x32xbf16> to vector<32x32xbf16>
    %c0_4 = arith.constant 0 : index
    %c0_5 = arith.constant 0 : index
    %c0_6 = arith.constant 0 : index
    %4 = vector.load %arg3[%c0_4, %c0_5, %c0_6] : memref<8x1x32xf32, #tpu.memory_space<vmem>>, vector<1x1x32xf32>
    %5 = vector.shape_cast %4 : vector<1x1x32xf32> to vector<1x32xf32>
    %cst = arith.constant dense<0.000000e+00> : vector<16x32xf32>
    %6 = tpu.matmul %1, %3, %cst {dimension_numbers = #tpu.dot_dimension_numbers<[1], [0], [0], [1], [0, 0, 1, 1], [], []>} : vector<16x32xbf16>, vector<32x32xbf16>, vector<16x32xf32> -> vector<16x32xf32>
    %7 = vector.broadcast %5 : vector<1x32xf32> to vector<16x32xf32>
    %8 = arith.addf %6, %7 : vector<16x32xf32>
    %cst_7 = arith.constant 0.000000e+00 : f32
    %9 = vector.broadcast %cst_7 : f32 to vector<16x32xf32>
    %10 = arith.maximumf %8, %9 : vector<16x32xf32>
    %11 = arith.truncf %10 : vector<16x32xf32> to vector<16x32xbf16>
    %c1 = arith.constant 1 : index
    %c0_8 = arith.constant 0 : index
    %c0_9 = arith.constant 0 : index
    %12 = vector.load %arg2[%c1, %c0_8, %c0_9] : memref<8x32x32xbf16, #tpu.memory_space<vmem>>, vector<1x32x32xbf16>
    %13 = vector.shape_cast %12 : vector<1x32x32xbf16> to vector<32x32xbf16>
    %c1_10 = arith.constant 1 : index
    %c0_11 = arith.constant 0 : index
    %c0_12 = arith.constant 0 : index
    %14 = vector.load %arg3[%c1_10, %c0_11, %c0_12] : memref<8x1x32xf32, #tpu.memory_space<vmem>>, vector<1x1x32xf32>
    %15 = vector.shape_cast %14 : vector<1x1x32xf32> to vector<1x32xf32>
    %cst_13 = arith.constant dense<0.000000e+00> : vector<16x32xf32>
    %16 = tpu.matmul %11, %13, %cst_13 {dimension_numbers = #tpu.dot_dimension_numbers<[1], [0], [0], [1], [0, 0, 1, 1], [], []>} : vector<16x32xbf16>, vector<32x32xbf16>, vector<16x32xf32> -> vector<16x32xf32>
    %17 = vector.broadcast %15 : vector<1x32xf32> to vector<16x32xf32>
    %18 = arith.addf %16, %17 : vector<16x32xf32>
    %cst_14 = arith.constant 5.000000e-01 : f32
    %19 = vector.broadcast %cst_14 : f32 to vector<16x32xf32>
    %20 = arith.mulf %19, %18 : vector<16x32xf32>
    %21 = math.tanh %20 : vector<16x32xf32>
    %cst_15 = arith.constant 5.000000e-01 : f32
    %22 = vector.broadcast %cst_15 : f32 to vector<16x32xf32>
    %23 = arith.mulf %22, %21 : vector<16x32xf32>
    %cst_16 = arith.constant 5.000000e-01 : f32
    %24 = vector.broadcast %cst_16 : f32 to vector<16x32xf32>
    %25 = arith.addf %23, %24 : vector<16x32xf32>
    %26 = arith.truncf %25 : vector<16x32xf32> to vector<16x32xbf16>
    %c2 = arith.constant 2 : index
    %c0_17 = arith.constant 0 : index
    %c0_18 = arith.constant 0 : index
    %27 = vector.load %arg2[%c2, %c0_17, %c0_18] : memref<8x32x32xbf16, #tpu.memory_space<vmem>>, vector<1x32x32xbf16>
    %28 = vector.shape_cast %27 : vector<1x32x32xbf16> to vector<32x32xbf16>
    %c2_19 = arith.constant 2 : index
    %c0_20 = arith.constant 0 : index
    %c0_21 = arith.constant 0 : index
    %29 = vector.load %arg3[%c2_19, %c0_20, %c0_21] : memref<8x1x32xf32, #tpu.memory_space<vmem>>, vector<1x1x32xf32>
    %30 = vector.shape_cast %29 : vector<1x1x32xf32> to vector<1x32xf32>
    %cst_22 = arith.constant dense<0.000000e+00> : vector<16x32xf32>
    %31 = tpu.matmul %26, %28, %cst_22 {dimension_numbers = #tpu.dot_dimension_numbers<[1], [0], [0], [1], [0, 0, 1, 1], [], []>} : vector<16x32xbf16>, vector<32x32xbf16>, vector<16x32xf32> -> vector<16x32xf32>
    %32 = vector.broadcast %30 : vector<1x32xf32> to vector<16x32xf32>
    %33 = arith.addf %31, %32 : vector<16x32xf32>
    %cst_23 = arith.constant 0.000000e+00 : f32
    %34 = vector.broadcast %cst_23 : f32 to vector<16x32xf32>
    %35 = arith.maximumf %33, %34 : vector<16x32xf32>
    %36 = arith.truncf %35 : vector<16x32xf32> to vector<16x32xbf16>
    %c3 = arith.constant 3 : index
    %c0_24 = arith.constant 0 : index
    %c0_25 = arith.constant 0 : index
    %37 = vector.load %arg2[%c3, %c0_24, %c0_25] : memref<8x32x32xbf16, #tpu.memory_space<vmem>>, vector<1x32x32xbf16>
    %38 = vector.shape_cast %37 : vector<1x32x32xbf16> to vector<32x32xbf16>
    %c3_26 = arith.constant 3 : index
    %c0_27 = arith.constant 0 : index
    %c0_28 = arith.constant 0 : index
    %39 = vector.load %arg3[%c3_26, %c0_27, %c0_28] : memref<8x1x32xf32, #tpu.memory_space<vmem>>, vector<1x1x32xf32>
    %40 = vector.shape_cast %39 : vector<1x1x32xf32> to vector<1x32xf32>
    %cst_29 = arith.constant dense<0.000000e+00> : vector<16x32xf32>
    %41 = tpu.matmul %36, %38, %cst_29 {dimension_numbers = #tpu.dot_dimension_numbers<[1], [0], [0], [1], [0, 0, 1, 1], [], []>} : vector<16x32xbf16>, vector<32x32xbf16>, vector<16x32xf32> -> vector<16x32xf32>
    %42 = vector.broadcast %40 : vector<1x32xf32> to vector<16x32xf32>
    %43 = arith.addf %41, %42 : vector<16x32xf32>
    %cst_30 = arith.constant 5.000000e-01 : f32
    %44 = vector.broadcast %cst_30 : f32 to vector<16x32xf32>
    %45 = arith.mulf %44, %43 : vector<16x32xf32>
    %46 = math.tanh %45 : vector<16x32xf32>
    %cst_31 = arith.constant 5.000000e-01 : f32
    %47 = vector.broadcast %cst_31 : f32 to vector<16x32xf32>
    %48 = arith.mulf %47, %46 : vector<16x32xf32>
    %cst_32 = arith.constant 5.000000e-01 : f32
    %49 = vector.broadcast %cst_32 : f32 to vector<16x32xf32>
    %50 = arith.addf %48, %49 : vector<16x32xf32>
    %51 = arith.truncf %50 : vector<16x32xf32> to vector<16x32xbf16>
    %c4 = arith.constant 4 : index
    %c0_33 = arith.constant 0 : index
    %c0_34 = arith.constant 0 : index
    %52 = vector.load %arg2[%c4, %c0_33, %c0_34] : memref<8x32x32xbf16, #tpu.memory_space<vmem>>, vector<1x32x32xbf16>
    %53 = vector.shape_cast %52 : vector<1x32x32xbf16> to vector<32x32xbf16>
    %c4_35 = arith.constant 4 : index
    %c0_36 = arith.constant 0 : index
    %c0_37 = arith.constant 0 : index
    %54 = vector.load %arg3[%c4_35, %c0_36, %c0_37] : memref<8x1x32xf32, #tpu.memory_space<vmem>>, vector<1x1x32xf32>
    %55 = vector.shape_cast %54 : vector<1x1x32xf32> to vector<1x32xf32>
    %cst_38 = arith.constant dense<0.000000e+00> : vector<16x32xf32>
    %56 = tpu.matmul %51, %53, %cst_38 {dimension_numbers = #tpu.dot_dimension_numbers<[1], [0], [0], [1], [0, 0, 1, 1], [], []>} : vector<16x32xbf16>, vector<32x32xbf16>, vector<16x32xf32> -> vector<16x32xf32>
    %57 = vector.broadcast %55 : vector<1x32xf32> to vector<16x32xf32>
    %58 = arith.addf %56, %57 : vector<16x32xf32>
    %cst_39 = arith.constant 0.000000e+00 : f32
    %59 = vector.broadcast %cst_39 : f32 to vector<16x32xf32>
    %60 = arith.maximumf %58, %59 : vector<16x32xf32>
    %61 = arith.truncf %60 : vector<16x32xf32> to vector<16x32xbf16>
    %c5 = arith.constant 5 : index
    %c0_40 = arith.constant 0 : index
    %c0_41 = arith.constant 0 : index
    %62 = vector.load %arg2[%c5, %c0_40, %c0_41] : memref<8x32x32xbf16, #tpu.memory_space<vmem>>, vector<1x32x32xbf16>
    %63 = vector.shape_cast %62 : vector<1x32x32xbf16> to vector<32x32xbf16>
    %c5_42 = arith.constant 5 : index
    %c0_43 = arith.constant 0 : index
    %c0_44 = arith.constant 0 : index
    %64 = vector.load %arg3[%c5_42, %c0_43, %c0_44] : memref<8x1x32xf32, #tpu.memory_space<vmem>>, vector<1x1x32xf32>
    %65 = vector.shape_cast %64 : vector<1x1x32xf32> to vector<1x32xf32>
    %cst_45 = arith.constant dense<0.000000e+00> : vector<16x32xf32>
    %66 = tpu.matmul %61, %63, %cst_45 {dimension_numbers = #tpu.dot_dimension_numbers<[1], [0], [0], [1], [0, 0, 1, 1], [], []>} : vector<16x32xbf16>, vector<32x32xbf16>, vector<16x32xf32> -> vector<16x32xf32>
    %67 = vector.broadcast %65 : vector<1x32xf32> to vector<16x32xf32>
    %68 = arith.addf %66, %67 : vector<16x32xf32>
    %cst_46 = arith.constant 5.000000e-01 : f32
    %69 = vector.broadcast %cst_46 : f32 to vector<16x32xf32>
    %70 = arith.mulf %69, %68 : vector<16x32xf32>
    %71 = math.tanh %70 : vector<16x32xf32>
    %cst_47 = arith.constant 5.000000e-01 : f32
    %72 = vector.broadcast %cst_47 : f32 to vector<16x32xf32>
    %73 = arith.mulf %72, %71 : vector<16x32xf32>
    %cst_48 = arith.constant 5.000000e-01 : f32
    %74 = vector.broadcast %cst_48 : f32 to vector<16x32xf32>
    %75 = arith.addf %73, %74 : vector<16x32xf32>
    %76 = arith.truncf %75 : vector<16x32xf32> to vector<16x32xbf16>
    %c6 = arith.constant 6 : index
    %c0_49 = arith.constant 0 : index
    %c0_50 = arith.constant 0 : index
    %77 = vector.load %arg2[%c6, %c0_49, %c0_50] : memref<8x32x32xbf16, #tpu.memory_space<vmem>>, vector<1x32x32xbf16>
    %78 = vector.shape_cast %77 : vector<1x32x32xbf16> to vector<32x32xbf16>
    %c6_51 = arith.constant 6 : index
    %c0_52 = arith.constant 0 : index
    %c0_53 = arith.constant 0 : index
    %79 = vector.load %arg3[%c6_51, %c0_52, %c0_53] : memref<8x1x32xf32, #tpu.memory_space<vmem>>, vector<1x1x32xf32>
    %80 = vector.shape_cast %79 : vector<1x1x32xf32> to vector<1x32xf32>
    %cst_54 = arith.constant dense<0.000000e+00> : vector<16x32xf32>
    %81 = tpu.matmul %76, %78, %cst_54 {dimension_numbers = #tpu.dot_dimension_numbers<[1], [0], [0], [1], [0, 0, 1, 1], [], []>} : vector<16x32xbf16>, vector<32x32xbf16>, vector<16x32xf32> -> vector<16x32xf32>
    %82 = vector.broadcast %80 : vector<1x32xf32> to vector<16x32xf32>
    %83 = arith.addf %81, %82 : vector<16x32xf32>
    %cst_55 = arith.constant 0.000000e+00 : f32
    %84 = vector.broadcast %cst_55 : f32 to vector<16x32xf32>
    %85 = arith.maximumf %83, %84 : vector<16x32xf32>
    %86 = arith.truncf %85 : vector<16x32xf32> to vector<16x32xbf16>
    %c7 = arith.constant 7 : index
    %c0_56 = arith.constant 0 : index
    %c0_57 = arith.constant 0 : index
    %87 = vector.load %arg2[%c7, %c0_56, %c0_57] : memref<8x32x32xbf16, #tpu.memory_space<vmem>>, vector<1x32x32xbf16>
    %88 = vector.shape_cast %87 : vector<1x32x32xbf16> to vector<32x32xbf16>
    %c7_58 = arith.constant 7 : index
    %c0_59 = arith.constant 0 : index
    %c0_60 = arith.constant 0 : index
    %89 = vector.load %arg3[%c7_58, %c0_59, %c0_60] : memref<8x1x32xf32, #tpu.memory_space<vmem>>, vector<1x1x32xf32>
    %90 = vector.shape_cast %89 : vector<1x1x32xf32> to vector<1x32xf32>
    %cst_61 = arith.constant dense<0.000000e+00> : vector<16x32xf32>
    %91 = tpu.matmul %86, %88, %cst_61 {dimension_numbers = #tpu.dot_dimension_numbers<[1], [0], [0], [1], [0, 0, 1, 1], [], []>} : vector<16x32xbf16>, vector<32x32xbf16>, vector<16x32xf32> -> vector<16x32xf32>
    %92 = vector.broadcast %90 : vector<1x32xf32> to vector<16x32xf32>
    %93 = arith.addf %91, %92 : vector<16x32xf32>
    %cst_62 = arith.constant 5.000000e-01 : f32
    %94 = vector.broadcast %cst_62 : f32 to vector<16x32xf32>
    %95 = arith.mulf %94, %93 : vector<16x32xf32>
    %96 = math.tanh %95 : vector<16x32xf32>
    %cst_63 = arith.constant 5.000000e-01 : f32
    %97 = vector.broadcast %cst_63 : f32 to vector<16x32xf32>
    %98 = arith.mulf %97, %96 : vector<16x32xf32>
    %cst_64 = arith.constant 5.000000e-01 : f32
    %99 = vector.broadcast %cst_64 : f32 to vector<16x32xf32>
    %100 = arith.addf %98, %99 : vector<16x32xf32>
    %c0_65 = arith.constant 0 : index
    %c0_66 = arith.constant 0 : index
    %101 = vector.load %arg4[%c0_65, %c0_66] : memref<16x32xf32, #tpu.memory_space<vmem>>, vector<16x32xf32>
    tpu.vector_store %arg4[%c0_65, %c0_66], %100 {strides = array<i32>} : memref<16x32xf32, #tpu.memory_space<vmem>>, vector<16x32xf32>,
    return
  }
  func.func @transform_0(%arg0: i32) -> (i32, i32) {
    %c0_i32 = arith.constant 0 : i32
    %c0_i32_0 = arith.constant 0 : i32
    return %arg0, %c0_i32 : i32, i32
  }
  func.func @transform_1(%arg0: i32) -> (i32, i32, i32) {
    %c0_i32 = arith.constant 0 : i32
    %c0_i32_0 = arith.constant 0 : i32
    %c0_i32_1 = arith.constant 0 : i32
    %c0_i32_2 = arith.constant 0 : i32
    return %c0_i32, %c0_i32_0, %c0_i32_1 : i32, i32, i32
  }
  func.func @transform_2(%arg0: i32) -> (i32, i32, i32) {
    %c0_i32 = arith.constant 0 : i32
    %c0_i32_0 = arith.constant 0 : i32
    %c0_i32_1 = arith.constant 0 : i32
    %c0_i32_2 = arith.constant 0 : i32
    return %c0_i32, %c0_i32_0, %c0_i32_1 : i32, i32, i32
  }
  func.func @transform_3(%arg0: i32) -> (i32, i32) {
    %c0_i32 = arith.constant 0 : i32
    %c0_i32_0 = arith.constant 0 : i32
    return %arg0, %c0_i32 : i32, i32
  }
}

</mosaic_0001>

<bundles_post_ra>
// kernel: net_forward.1
= control target key start
LH: loop header
LB: loop body
LE: loop exit
PB: predicated region body
PF: predicated region fallthrough
CT: control target
= control target key end

     0   :  { %8 = vsyncpa [#allocation3], 0  ;;  %s967_s0 = inlined_call_operand.vmem [shape: f32[16,32], index: 0, kind: input, shape index: {}]   ;;  %s968_s1 = inlined_call_operand.hbm [shape: bf16[8,32,32], index: 1, kind: input, shape index: {}]   ;;  %s969_s2 = inlined_call_operand.vmem [shape: f32[8,1,32], index: 2, kind: input, shape index: {}]   ;;  %s970_s3 = inlined_call_operand.hbm [shape: f32[16,32], index: 3, kind: output, shape index: {}]  }
   0x1   :  { %9 = vsyncpa [#allocation4], 0  ;;  %s861_s12 = smov [#allocation2]  }
   0x2   :  { %s17_s13 = sshll.u32 %s861_s12, 4  ;;  %s18_s13 = int_to_ptr.vmem [resolvable:$true] %s17_s13 }
   0x3   :  { %s825_s14 = scalar_lea.vmem %s18_s13, 2048  ;;  %p830_p1 = scmp.lt.s32.totalorder %s18_s13, %s18_s13 }
   0x4   :  { %p826_p0 = scmp.ne.s32.totalorder %s18_s13, %s825_s14  ;;  %p831_p2 = scmp.lt.s32.totalorder %s825_s14, %s825_s14 }
   0x6   :  { %p832_p3 = por %p831_p2, %p830_p1 }
   0x8   :  { %p833_p4 = pnand %p832_p3, %p826_p0 }
   0xa   :  { %836 = shalt.err (!%p833_p4)
}
   0xb   :  { %s862_s15 = smov 64   ;;  %s863_s16 = smov 4  }
   0xc   :  { %23 = dma.hbm_to_vmem [thread:$0]  %s968_s1, 2048, %s18_s13, [#allocation3], %s862_s15, %s862_s15, %s863_s16  }
   0xd   :  { %857 = dma.done.wait [#allocation3], 2048  }
   0xe   :  { %858 = vsyncadd [#allocation3], 4294965248  ;;  %v864_v0 = vmov 0.0   ;;  %vm865_vm0 = vmmov 0   ;;  %v785_v1 = vld [vmem:[#allocation2 + $0x8] sm:$0xff]   ;;  %v786_v2 = vld [vmem:[#allocation2] sm:$0xff]  }
   0xf   :  { %713 = vmatprep.subr.bf16.mxu0 %v864_v0  ;;  %717 = vmatprep.mubr.msk.bf16.mxu0 %vm865_vm0, %v864_v0  ;;  %v30_v3 = vld [vmem:[%s967_s0] sm:$0xff]  ;;  %v31_v4 = vld [vmem:[%s967_s0 + $0x8] sm:$0xff]  ;;  %vm56_vm1 = vcmask 261120   ;;  %v787_v6 = vld [vmem:[#allocation2 + $0x18] sm:$0xff]   ;;  %s866_s10 = smov [#allocation5]  }
  0x10   :  { %721 = vmatprep.subr.bf16.mxu1 %v864_v0  ;;  %725 = vmatprep.mubr.msk.bf16.mxu1 %vm865_vm0, %v864_v0  ;;  %v32_v5 = vpack.c.bf16 %v31_v4, %v30_v3  ;;  %v788_v7 = vld [vmem:[#allocation2 + $0x10] sm:$0xff]   ;;  %v650_v8 = vld [vmem:[%s969_s2] ss:$0 sm:$0xff]  ;;  %v789_v18 = vld [vmem:[#allocation2 + $0x28] sm:$0xff]   ;;  %s638_s11 = sshll.u32 %s866_s10, 4  ;;  %s639_s11 = int_to_ptr.vmem [resolvable:$true] %s638_s11 }
  0x11   :  { %714 = vmatpush3.bf16.msra.mxu0 %v785_v1  ;;  %722 = vmatpush3.bf16.msra.mxu1 %v787_v6  ;;  %v790_v19 = vld [vmem:[#allocation2 + $0x20] sm:$0xff]   ;;  %v791_v36 = vld [vmem:[#allocation2 + $0x38] sm:$0xff]   ;;  %v792_v37 = vld [vmem:[#allocation2 + $0x30] sm:$0xff]   ;;  %p842_p6 = scmp.lt.s32.totalorder %s639_s11, %s639_s11 }
  0x12   :  { %715 = vmatprep.subr.bf16.mxu0 %v864_v0  ;;  %723 = vmatprep.subr.bf16.mxu1 %v864_v0  ;;  %v655_v20 = vld [vmem:[%s969_s2 + $0x1] ss:$0 sm:$0xff]  ;;  %v660_v38 = vld [vmem:[%s969_s2 + $0x2] ss:$0 sm:$0xff]  ;;  %v793_v48 = vld [vmem:[#allocation2 + $0x48] sm:$0xff]  }
  0x13   :  { %v794_v49 = vld [vmem:[#allocation2 + $0x40] sm:$0xff]   ;;  %v795_v3 = vld [vmem:[#allocation2 + $0x58] sm:$0xff]   ;;  %v796_v4 = vld [vmem:[#allocation2 + $0x50] sm:$0xff]  }
  0x14   :  { %v665_v50 = vld [vmem:[%s969_s2 + $0x3] ss:$0 sm:$0xff] }
  0x15   :  { %716 = vmatpush3.bf16.msra.mxu0 %v786_v2  ;;  %724 = vmatpush3.bf16.msra.mxu1 %v788_v7 }
  0x16   :  { %729 = vmatprep.subr.bf16.mxu0 %v864_v0  ;;  %737 = vmatprep.subr.bf16.mxu1 %v864_v0 }
  0x18   :  { %718 = vmatmul.mubr.msk.bf16.vlgmr.msra.gmra.mxu0 %vm56_vm1, %v32_v5  ;;  %v670_v5 = vld [vmem:[%s969_s2 + $0x4] ss:$0 sm:$0xff] }
  0x19   :  { %733 = vmatprep.mubr.msk.bf16.mxu0 %vm865_vm0, %v864_v0  ;;  %730 = vmatpush3.bf16.msra.mxu0 %v789_v18 }
  0x1a   :  { %731 = vmatprep.subr.bf16.mxu0 %v864_v0 }
  0x1d   :  { %732 = vmatpush3.bf16.msra.mxu0 %v790_v19 }
  0x1e   :  { %745 = vmatprep.subr.bf16.mxu0 %v864_v0 }
  0xd8   :  { %v94_v9 = vpop.f32.mrf.mxu0 }
  0xd9   :  { %v95_v11 = vadd.f32 %v650_v8, %v94_v9 }
  0xda   :  { %v719_v10 = vpop.f32.mrf.mxu0 }
  0xdb   :  { %v101_v15 = vmax.f32 %v95_v11, 0.0 }
  0xdc   :  { %v97_v12 = vpop.f32.mrf.mxu0 }
  0xdd   :  { %v98_v13 = vadd.f32 %v650_v8, %v97_v12 }
  0xde   :  { %v720_v14 = vpop.f32.mrf.mxu0 }
  0xdf   :  { %v102_v16 = vmax.f32 %v98_v13, 0.0 }
  0xe1   :  { %v103_v17 = vpack.c.bf16 %v102_v16, %v101_v15  ;;  %v797_v15 = vld [vmem:[#allocation2 + $0x68] sm:$0xff]   ;;  %v798_v16 = vld [vmem:[#allocation2 + $0x60] sm:$0xff]  }
  0xe3   :  { %726 = vmatmul.mubr.msk.bf16.vlgmr.msra.gmra.mxu1 %vm56_vm1, %v103_v17  ;;  %v675_v17 = vld [vmem:[%s969_s2 + $0x5] ss:$0 sm:$0xff] }
  0xe4   :  { %741 = vmatprep.mubr.msk.bf16.mxu1 %vm865_vm0, %v864_v0  ;;  %738 = vmatpush3.bf16.msra.mxu1 %v791_v36 }
  0xe5   :  { %739 = vmatprep.subr.bf16.mxu1 %v864_v0 }
  0xe8   :  { %740 = vmatpush3.bf16.msra.mxu1 %v792_v37 }
  0xe9   :  { %753 = vmatprep.subr.bf16.mxu1 %v864_v0 }
 0x1a3   :  { %v166_v21 = vpop.f32.mrf.mxu1 }
 0x1a4   :  { %v167_v22 = vadd.f32 %v655_v20, %v166_v21 }
 0x1a5   :  { %v727_v23 = vpop.f32.mrf.mxu1 }
 0x1a6   :  { %v173_v24 = vmul.f32 0.5, %v167_v22 }
 0x1a7   :  { %v169_v25 = vpop.f32.mrf.mxu1 }
 0x1a8   :  { %801 = vtanh.f32 %v173_v24  ;;  %v170_v26 = vadd.f32 %v655_v20, %v169_v25 }
 0x1a9   :  { %v728_v27 = vpop.f32.mrf.mxu1 }
 0x1aa   :  { %v174_v28 = vmul.f32 0.5, %v170_v26 }
 0x1ac   :  { %803 = vtanh.f32 %v174_v28 }
 0x1b5   :  { %v802_v29 = vpop.eup %801 }
 0x1b6   :  { %v177_v30 = vmul.f32 0.5, %v802_v29 }
 0x1b8   :  { %v179_v33 = vadd.f32 0.5, %v177_v30 }
 0x1b9   :  { %v804_v31 = vpop.eup %803 }
 0x1ba   :  { %v178_v32 = vmul.f32 0.5, %v804_v31 }
 0x1bc   :  { %v180_v34 = vadd.f32 0.5, %v178_v32 }
 0x1be   :  { %v181_v35 = vpack.c.bf16 %v180_v34, %v179_v33  ;;  %v799_v33 = vld [vmem:[#allocation2 + $0x78] sm:$0xff]   ;;  %v800_v34 = vld [vmem:[#allocation2 + $0x70] sm:$0xff]  }
 0x1c0   :  { %734 = vmatmul.mubr.msk.bf16.vlgmr.msra.gmra.mxu0 %vm56_vm1, %v181_v35  ;;  %v680_v35 = vld [vmem:[%s969_s2 + $0x6] ss:$0 sm:$0xff] }
 0x1c1   :  { %749 = vmatprep.mubr.msk.bf16.mxu0 %vm865_vm0, %v864_v0  ;;  %746 = vmatpush3.bf16.msra.mxu0 %v793_v48 }
 0x1c2   :  { %747 = vmatprep.subr.bf16.mxu0 %v864_v0 }
 0x1c5   :  { %748 = vmatpush3.bf16.msra.mxu0 %v794_v49 }
 0x1c6   :  { %761 = vmatprep.subr.bf16.mxu0 %v864_v0 }
 0x280   :  { %v244_v39 = vpop.f32.mrf.mxu0 }
 0x281   :  { %v245_v41 = vadd.f32 %v660_v38, %v244_v39 }
 0x282   :  { %v735_v40 = vpop.f32.mrf.mxu0 }
 0x283   :  { %v251_v45 = vmax.f32 %v245_v41, 0.0 }
 0x284   :  { %v247_v42 = vpop.f32.mrf.mxu0 }
 0x285   :  { %v248_v43 = vadd.f32 %v660_v38, %v247_v42 }
 0x286   :  { %v736_v44 = vpop.f32.mrf.mxu0 }
 0x287   :  { %v252_v46 = vmax.f32 %v248_v43, 0.0 }
 0x289   :  { %v253_v47 = vpack.c.bf16 %v252_v46, %v251_v45 }
 0x28b   :  { %742 = vmatmul.mubr.msk.bf16.vlgmr.msra.gmra.mxu1 %vm56_vm1, %v253_v47 }
 0x28c   :  { %757 = vmatprep.mubr.msk.bf16.mxu1 %vm865_vm0, %v864_v0  ;;  %754 = vmatpush3.bf16.msra.mxu1 %v795_v3 }
 0x28d   :  { %755 = vmatprep.subr.bf16.mxu1 %v864_v0 }
 0x290   :  { %756 = vmatpush3.bf16.msra.mxu1 %v796_v4 }
 0x291   :  { %769 = vmatprep.subr.bf16.mxu1 %v864_v0 }
 0x34b   :  { %v316_v51 = vpop.f32.mrf.mxu1 }
 0x34c   :  { %v317_v52 = vadd.f32 %v665_v50, %v316_v51 }
 0x34d   :  { %v743_v53 = vpop.f32.mrf.mxu1 }
 0x34e   :  { %v323_v54 = vmul.f32 0.5, %v317_v52 }
 0x34f   :  { %v319_v55 = vpop.f32.mrf.mxu1 }
 0x350   :  { %805 = vtanh.f32 %v323_v54  ;;  %v320_v56 = vadd.f32 %v665_v50, %v319_v55 }
 0x351   :  { %v744_v57 = vpop.f32.mrf.mxu1 }
 0x352   :  { %v324_v58 = vmul.f32 0.5, %v320_v56 }
 0x354   :  { %807 = vtanh.f32 %v324_v58 }
 0x35d   :  { %v806_v59 = vpop.eup %805 }
 0x35e   :  { %v327_v60 = vmul.f32 0.5, %v806_v59 }
 0x360   :  { %v329_v63 = vadd.f32 0.5, %v327_v60 }
 0x361   :  { %v808_v61 = vpop.eup %807 }
 0x362   :  { %v328_v62 = vmul.f32 0.5, %v808_v61 }
 0x364   :  { %v330_v1 = vadd.f32 0.5, %v328_v62 }
 0x366   :  { %v331_v2 = vpack.c.bf16 %v330_v1, %v329_v63 }
 0x368   :  { %750 = vmatmul.mubr.msk.bf16.vlgmr.msra.gmra.mxu0 %vm56_vm1, %v331_v2 }
 0x369   :  { %765 = vmatprep.mubr.msk.bf16.mxu0 %vm865_vm0, %v864_v0  ;;  %762 = vmatpush3.bf16.msra.mxu0 %v797_v15 }
 0x36a   :  { %763 = vmatprep.subr.bf16.mxu0 %v864_v0 }
 0x36d   :  { %764 = vmatpush3.bf16.msra.mxu0 %v798_v16 }
 0x428   :  { %v394_v6 = vpop.f32.mrf.mxu0 }
 0x429   :  { %v395_v8 = vadd.f32 %v670_v5, %v394_v6 }
 0x42a   :  { %v751_v7 = vpop.f32.mrf.mxu0 }
 0x42b   :  { %v401_v12 = vmax.f32 %v395_v8, 0.0 }
 0x42c   :  { %v397_v9 = vpop.f32.mrf.mxu0 }
 0x42d   :  { %v398_v10 = vadd.f32 %v670_v5, %v397_v9 }
 0x42e   :  { %v752_v11 = vpop.f32.mrf.mxu0 }
 0x42f   :  { %v402_v13 = vmax.f32 %v398_v10, 0.0 }
 0x431   :  { %v403_v14 = vpack.c.bf16 %v402_v13, %v401_v12 }
 0x433   :  { %758 = vmatmul.mubr.msk.bf16.vlgmr.msra.gmra.mxu1 %vm56_vm1, %v403_v14 }
 0x434   :  { %773 = vmatprep.mubr.msk.bf16.mxu1 %vm865_vm0, %v864_v0  ;;  %770 = vmatpush3.bf16.msra.mxu1 %v799_v33 }
 0x435   :  { %771 = vmatprep.subr.bf16.mxu1 %v864_v0  ;;  %v685_v0 = vld [vmem:[%s969_s2 + $0x7] ss:$0 sm:$0xff]  ;;  %s837_s2 = scalar_lea.vmem %s639_s11, 256 }
 0x436   :  { %p838_p5 = scmp.ne.s32.totalorder %s639_s11, %s837_s2  ;;  %p843_p7 = scmp.lt.s32.totalorder %s837_s2, %s837_s2 }
 0x438   :  { %772 = vmatpush3.bf16.msra.mxu1 %v800_v34  ;;  %p844_p8 = por %p843_p7, %p842_p6 }
 0x43a   :  { %p845_p9 = pnand %p844_p8, %p838_p5 }
 0x4f3   :  { %v466_v18 = vpop.f32.mrf.mxu1 }
 0x4f4   :  { %v467_v19 = vadd.f32 %v675_v17, %v466_v18 }
 0x4f5   :  { %v759_v20 = vpop.f32.mrf.mxu1 }
 0x4f6   :  { %v473_v21 = vmul.f32 0.5, %v467_v19 }
 0x4f7   :  { %v469_v22 = vpop.f32.mrf.mxu1 }
 0x4f8   :  { %809 = vtanh.f32 %v473_v21  ;;  %v470_v23 = vadd.f32 %v675_v17, %v469_v22 }
 0x4f9   :  { %v760_v24 = vpop.f32.mrf.mxu1 }
 0x4fa   :  { %v474_v25 = vmul.f32 0.5, %v470_v23 }
 0x4fc   :  { %811 = vtanh.f32 %v474_v25 }
 0x505   :  { %v810_v26 = vpop.eup %809 }
 0x506   :  { %v477_v27 = vmul.f32 0.5, %v810_v26 }
 0x508   :  { %v479_v30 = vadd.f32 0.5, %v477_v27 }
 0x509   :  { %v812_v28 = vpop.eup %811 }
 0x50a   :  { %v478_v29 = vmul.f32 0.5, %v812_v28 }
 0x50c   :  { %v480_v31 = vadd.f32 0.5, %v478_v29 }
 0x50e   :  { %v481_v32 = vpack.c.bf16 %v480_v31, %v479_v30 }
 0x510   :  { %766 = vmatmul.mubr.msk.bf16.vlgmr.msra.gmra.mxu0 %vm56_vm1, %v481_v32 }
 0x5d0   :  { %v544_v36 = vpop.f32.mrf.mxu0 }
 0x5d1   :  { %v545_v38 = vadd.f32 %v680_v35, %v544_v36 }
 0x5d2   :  { %v767_v37 = vpop.f32.mrf.mxu0 }
 0x5d3   :  { %v551_v42 = vmax.f32 %v545_v38, 0.0 }
 0x5d4   :  { %v547_v39 = vpop.f32.mrf.mxu0 }
 0x5d5   :  { %v548_v40 = vadd.f32 %v680_v35, %v547_v39 }
 0x5d6   :  { %v768_v41 = vpop.f32.mrf.mxu0 }
 0x5d7   :  { %v552_v43 = vmax.f32 %v548_v40, 0.0 }
 0x5d9   :  { %v553_v44 = vpack.c.bf16 %v552_v43, %v551_v42 }
 0x5db   :  { %774 = vmatmul.mubr.msk.bf16.vlgmr.msra.gmra.mxu1 %vm56_vm1, %v553_v44 }
 0x69b   :  { %v616_v45 = vpop.f32.mrf.mxu1 }
 0x69c   :  { %v617_v46 = vadd.f32 %v685_v0, %v616_v45 }
 0x69d   :  { %v775_v47 = vpop.f32.mrf.mxu1 }
 0x69e   :  { %v623_v48 = vmul.f32 0.5, %v617_v46 }
 0x69f   :  { %v619_v49 = vpop.f32.mrf.mxu1 }
 0x6a0   :  { %813 = vtanh.f32 %v623_v48  ;;  %v620_v50 = vadd.f32 %v685_v0, %v619_v49 }
 0x6a1   :  { %v776_v51 = vpop.f32.mrf.mxu1 }
 0x6a2   :  { %v624_v52 = vmul.f32 0.5, %v620_v50 }
 0x6a4   :  { %815 = vtanh.f32 %v624_v52 }
 0x6ad   :  { %v814_v53 = vpop.eup %813 }
 0x6ae   :  { %v627_v54 = vmul.f32 0.5, %v814_v53 }
 0x6b0   :  { %v629_v55 = vadd.f32 0.5, %v627_v54 }
 0x6b1   :  { %v816_v56 = vpop.eup %815 }
 0x6b2   :  { %631 = vst.msk [vmem:[#allocation5] sm:$0xff] %vm56_vm1, %v629_v55  ;;  %v628_v57 = vmul.f32 0.5, %v816_v56 }
 0x6b4   :  { %v630_v58 = vadd.f32 0.5, %v628_v57 }
 0x6b6   :  { %632 = vst.msk [vmem:[#allocation5 + $0x8] sm:$0xff] %vm56_vm1, %v630_v58 }
 0x6b7   :  { %848 = shalt.err (!%p845_p9)
}
 0x6b8   :  { %s867_s12 = smov 128   ;;  %s868_s13 = smov 8  }
 0x6b9   :  { %644 = dma.vmem_to_hbm [thread:$0]  %s639_s11, 256, %s970_s3, [#allocation4], %s867_s12, %s867_s12, %s868_s13  }
 0x6ba   :  { %859 = dma.done.wait [#allocation4], 256  }
 0x6bb   :  { %860 = vsyncadd [#allocation4], 4294967040 }
 0x6bc   :  { %648 = vsyncpa [#allocation3], 1 }
 0x6bd   :  { %649 = vsyncpa [#allocation4], 1 }

</bundles_post_ra>
